<compile_context>
chip_gen: v7x
topology: tpu7x:2x2x1
jax: 0.10.0
libtpu: 0.0.40
codegen_flags: <defaults>
</compile_context>

<pallas_src>
import functools

import jax
import jax.numpy as jnp
from jax.experimental import pallas as pl
from jax.experimental.pallas import tpu as pltpu


def _round_up(x, m):
    return (x + m - 1) // m * m


def _vmem_budget_bytes():
    """Generation-aware VMEM budget for tile sizing (~75% of physical VMEM)."""
    try:
        cap = int(pltpu.get_tpu_info().vmem_capacity_bytes)
    except Exception:
        cap = 64 * 1024 * 1024  # conservative fallback: v7x physical VMEM
    # ~48 MiB on v7x (64 MiB physical), ~96 MiB on v5e/v6e (128 MiB physical).
    return (cap * 3) // 4


def _matmul_kernel(p_ref, w_ref, o_ref):
    # p_ref: (TM, K) patch tile; w_ref: (K, TN) weight tile (VMEM-resident when the N grid
    # extent is 1); o_ref: (TM, TN) output tile.  f32 accumulation on the MXU.
    o_ref[...] = jnp.dot(
        p_ref[...], w_ref[...], preferred_element_type=jnp.float32
    ).astype(o_ref.dtype)


@functools.partial(
    jax.jit, static_argnames=("patch_size", "compute_dtype", "channels_last")
)
def patchify_forward(x, weight, patch_size, compute_dtype=None, channels_last=False):
    """Equivalent of Patchify.forward (Conv2d k=(8,P), s=(8,P), padding=0, no bias).

    x:       (B, C, H, W)  NCHW, H % 8 == 0, W % patch_size == 0
    weight:  (O, C, 8, patch_size)  OIHW (PyTorch conv weight layout)
    compute_dtype: optional MXU operand dtype (e.g. jnp.bfloat16 — recommended on all of
        v5e/v6e/v7x since the op is HBM-bandwidth-bound); accumulation is always f32 and
        the output keeps x's original dtype.
    channels_last: if True, return (B, H//8, W//patch_size, O) and skip the NCHW permute.
    returns: (B, O, H//8, W//patch_size) NCHW by default.
    """
    B, C, H, W = x.shape
    O = weight.shape[0]
    kh, kw = 8, patch_size
    assert H % kh == 0 and W % kw == 0, "H must be divisible by 8 and W by patch_size"
    nH, nW = H // kh, W // kw
    M, K = B * nH * nW, C * kh * kw
    out_dtype = x.dtype

    # Cast BEFORE the relayout so the extraction transpose moves the narrow dtype.
    if compute_dtype is not None:
        x = x.astype(compute_dtype)
        weight = weight.astype(compute_dtype)

    in_isz = jnp.dtype(x.dtype).itemsize
    w_isz = jnp.dtype(weight.dtype).itemsize
    out_isz = jnp.dtype(out_dtype).itemsize

    budget = _vmem_budget_bytes()
    headroom = 4 * 1024 * 1024

    # ---- out-channel (lane) dimension ------------------------------------------------
    O_pad = _round_up(O, 128)
    weight_fits = 2 * K * O_pad * w_isz <= budget // 2
    if weight_fits:
        # Full weight width resident in VMEM -> effective 1-D grid over M, weight DMA'd once.
        # Pad to a lane multiple only when the zero-column write overhead is small.
        pad_lanes = (O % 128 != 0) and ((O_pad - O) * 8 <= O)
        Npad = O_pad if pad_lanes else O
        TN = Npad
    else:
        # Rare for patchify: weight too large to keep whole -> tile N (weight re-fetched
        # per M tile); 128-multiple blocks required, so pad.
        Npad = O_pad
        TN = 512

    # ---- M (token) tile ----------------------------------------------------------------
    sub_min = {4: 8, 2: 16, 1: 32}.get(in_isz, 8)  # min sublane tile per operand dtype

    def working_set(tm, tn):
        # double-buffered input/output tiles + (conservatively) double-buffered weight
        return 2 * (tm * K * in_isz + K * tn * w_isz + tm * tn * out_isz)

    TM = min(128, _round_up(M, sub_min))
    for cand in (4096, 2048, 1024, 512, 256, 128):
        tm = min(cand, _round_up(M, sub_min))
        if working_set(tm, TN) + headroom <= budget:
            TM = tm
            break
    # v7x megacore: keep >= 2 M tiles so both TensorCores get work (neutral on v5e/v6e).
    if pl.cdiv(M, TM) < 2 and M > 2 * sub_min:
        TM = _round_up(pl.cdiv(M, 2), sub_min)

    grid_m, grid_n = pl.cdiv(M, TM), pl.cdiv(Npad, TN)

    # ---- operand prep: single fused XLA transpose (cast already applied above) ----------
    # Inner (c, kh, kw) order matches the OIHW weight flatten below.
    patches = (
        x.reshape(B, C, nH, kh, nW, kw)
        .transpose(0, 2, 4, 1, 3, 5)
        .reshape(M, K)
    )
    wmat = weight.reshape(O, K).T  # (K, O)
    if Npad != O:
        wmat = jnp.pad(wmat, ((0, 0), (0, Npad - O)))

    vmem_limit = int(max(working_set(TM, TN) + headroom, 16 * 1024 * 1024))

    w_reads = 1 if grid_n == 1 else grid_m * grid_n
    cost = pl.CostEstimate(
        flops=2 * M * K * Npad,
        transcendentals=0,
        bytes_accessed=M * K * in_isz + K * TN * w_isz * w_reads + M * Npad * out_isz,
    )

    out = pl.pallas_call(
        _matmul_kernel,
        out_shape=jax.ShapeDtypeStruct((M, Npad), out_dtype),
        grid_spec=pltpu.PrefetchScalarGridSpec(
            num_scalar_prefetch=0,
            grid=(grid_m, grid_n),
            in_specs=[
                pl.BlockSpec((TM, K), lambda i, j: (i, 0)),
                # Constant block index when grid_n == 1 -> weight fetched once, resident.
                pl.BlockSpec((K, TN), lambda i, j: (0, j)),
            ],
            out_specs=pl.BlockSpec((TM, TN), lambda i, j: (i, j)),
        ),
        compiler_params=pltpu.CompilerParams(
            dimension_semantics=("parallel", "parallel"),
            vmem_limit_bytes=vmem_limit,
        ),
        cost_estimate=cost,
    )(patches, wmat)

    # (M, Npad) -> (B, nH, nW, O); optionally skip the NCHW permute (extra HBM pass).
    out = out.reshape(B, nH, nW, Npad)[..., :O]
    if channels_last:
        return out
    return out.transpose(0, 3, 1, 2)  # NCHW, exact nn.Conv2d parity


if __name__ == "__main__":
    # Small deterministic example consistent with the module:
    #   in_channels=4, out_channels=32, patch_size=4, spatial 16x16, batch 2
    B, C, H, W = 2, 4, 16, 16
    O, P = 32, 4

    key = jax.random.PRNGKey(0)
    kx, kw_ = jax.random.split(key)
    x = jax.random.normal(kx, (B, C, H, W), dtype=jnp.float32)
    weight = jax.random.normal(kw_, (O, C, 8, P), dtype=jnp.float32) * 0.05

    # Pure-JAX reference (same conv semantics as torch.nn.Conv2d, NCHW/OIHW).
    y_ref = jax.lax.conv_general_dilated(
        x,
        weight,
        window_strides=(8, P),
        padding="VALID",
        dimension_numbers=("NCHW", "OIHW", "NCHW"),
    )

    # f32 path (exact Conv2d semantics, NCHW output).
    y = jax.block_until_ready(patchify_forward(x, weight, P))
    assert y.shape == (B, O, H // 8, W // P), y.shape
    assert jnp.allclose(y, y_ref, atol=1e-4, rtol=1e-4), "f32 mismatch vs conv reference"

    # bf16 compute path (recommended on v5e/v6e/v7x: the op is HBM-bandwidth-bound).
    y_bf16 = jax.block_until_ready(
        patchify_forward(x, weight, P, compute_dtype=jnp.bfloat16)
    )
    assert jnp.allclose(y_bf16, y_ref, atol=3e-2, rtol=3e-2), "bf16 mismatch vs conv reference"

    # channels_last output skips the trailing NCHW permute (extra HBM read+write).
    y_nhwc = jax.block_until_ready(patchify_forward(x, weight, P, channels_last=True))
    assert y_nhwc.shape == (B, H // 8, W // P, O), y_nhwc.shape
    assert jnp.allclose(y_nhwc.transpose(0, 3, 1, 2), y_ref, atol=1e-4, rtol=1e-4)

    print("KERNEL_OK")
</pallas_src>

<mosaic_0001>
module attributes {stable_mosaic.version = 11 : i64} {
  func.func @_matmul_kernel(%arg0: i32, %arg1: i32, %arg2: memref<16x128xf32, #tpu.memory_space<vmem>>, %arg3: memref<128x32xf32, #tpu.memory_space<vmem>>, %arg4: memref<16x32xf32, #tpu.memory_space<vmem>>) attributes {dimension_semantics = [#tpu.dimension_semantics<parallel>, #tpu.dimension_semantics<parallel>], iteration_bounds = array<i64: 1, 1>, scalar_prefetch = 0 : i64, scratch_operands = 0 : i64, tpu.core_type = #tpu.core_type<tc>, window_params = [{transform_indices = @transform_0, window_bounds = array<i64: 16, 128>}, {transform_indices = @transform_1, window_bounds = array<i64: 128, 32>}, {transform_indices = @transform_2, window_bounds = array<i64: 16, 32>}]} {
    %c0 = arith.constant 0 : index
    %c0_0 = arith.constant 0 : index
    %0 = vector.load %arg2[%c0, %c0_0] : memref<16x128xf32, #tpu.memory_space<vmem>>, vector<16x128xf32>
    %c0_1 = arith.constant 0 : index
    %c0_2 = arith.constant 0 : index
    %1 = vector.load %arg3[%c0_1, %c0_2] : memref<128x32xf32, #tpu.memory_space<vmem>>, vector<128x32xf32>
    %cst = arith.constant dense<0.000000e+00> : vector<16x32xf32>
    %2 = tpu.matmul %0, %1, %cst {dimension_numbers = #tpu.dot_dimension_numbers<[1], [0], [0], [1], [0, 0, 1, 1], [], []>} : vector<16x128xf32>, vector<128x32xf32>, vector<16x32xf32> -> vector<16x32xf32>
    %c0_3 = arith.constant 0 : index
    %c0_4 = arith.constant 0 : index
    %3 = vector.load %arg4[%c0_3, %c0_4] : memref<16x32xf32, #tpu.memory_space<vmem>>, vector<16x32xf32>
    tpu.vector_store %arg4[%c0_3, %c0_4], %2 {strides = array<i32>} : memref<16x32xf32, #tpu.memory_space<vmem>>, vector<16x32xf32>,
    return
  }
  func.func @transform_0(%arg0: i32, %arg1: i32) -> (i32, i32) {
    %c0_i32 = arith.constant 0 : i32
    %c0_i32_0 = arith.constant 0 : i32
    return %arg0, %c0_i32 : i32, i32
  }
  func.func @transform_1(%arg0: i32, %arg1: i32) -> (i32, i32) {
    %c0_i32 = arith.constant 0 : i32
    %c0_i32_0 = arith.constant 0 : i32
    return %c0_i32, %arg1 : i32, i32
  }
  func.func @transform_2(%arg0: i32, %arg1: i32) -> (i32, i32) {
    %c0_i32 = arith.constant 0 : i32
    return %arg0, %arg1 : i32, i32
  }
}

</mosaic_0001>

<bundles_post_ra>
// kernel: patchify_forward.1
= control target key start
LH: loop header
LB: loop body
LE: loop exit
PB: predicated region body
PF: predicated region fallthrough
CT: control target
= control target key end

     0   :  { %s320_s0 = inlined_call_operand.vmem [shape: f32[16,128], index: 0, kind: input, shape index: {}]   ;;  %s321_s1 = inlined_call_operand.vmem [shape: f32[128,32], index: 1, kind: input, shape index: {}]   ;;  %s322_s2 = inlined_call_operand.hbm [shape: f32[16,32], index: 2, kind: output, shape index: {}]  }
   0x1   :  { %v14_v0 = vld [vmem:[%s321_s1] sm:$0xff]  ;;  %v15_v1 = vld [vmem:[%s321_s1 + $0x8] sm:$0xff]  ;;  %v16_v2 = vld [vmem:[%s321_s1 + $0x10] sm:$0xff] }
   0x2   :  { %v177_v3 = vpack.c.bf16 %v15_v1, %v14_v0  ;;  %v17_v4 = vld [vmem:[%s321_s1 + $0x18] sm:$0xff]  ;;  %v18_v6 = vld [vmem:[%s321_s1 + $0x20] sm:$0xff]  ;;  %v19_v7 = vld [vmem:[%s321_s1 + $0x28] sm:$0xff] }
   0x3   :  { %v181_v5 = vpack.c.bf16 %v17_v4, %v16_v2  ;;  %v185_v8 = vpack.c.bf16 %v19_v7, %v18_v6  ;;  %v12_v9 = vld [vmem:[%s320_s0] sm:$0xff]  ;;  %v20_v10 = vld [vmem:[%s321_s1 + $0x30] sm:$0xff]  ;;  %v21_v11 = vld [vmem:[%s321_s1 + $0x38] sm:$0xff] }
   0x4   :  { %178 = vmatprep.subr.bf16.mxu0 %v177_v3  ;;  %174 = vmatprep.mubr.f32.mxu0 %v12_v9 }
   0x5   :  { %180 = vmatpush3.bf16.msra.mxu0 %v177_v3 }
   0x6   :  { %182 = vmatprep.subr.bf16.mxu0 %v181_v5 }
   0x7   :  { %7 = vsyncpa [#allocation3], 0  ;;  %v189_v12 = vpack.c.bf16 %v21_v11, %v20_v10  ;;  %v22_v13 = vld [vmem:[%s321_s1 + $0x40] sm:$0xff]  ;;  %v23_v14 = vld [vmem:[%s321_s1 + $0x48] sm:$0xff]  ;;  %s236_s17 = smov [#allocation2]   ;;  %vm105_vm0 = vcmask 261120  }
   0x8   :  { %v193_v15 = vpack.c.bf16 %v23_v14, %v22_v13  ;;  %v24_v16 = vld [vmem:[%s321_s1 + $0x50] sm:$0xff]  ;;  %v25_v17 = vld [vmem:[%s321_s1 + $0x58] sm:$0xff]  ;;  %v26_v19 = vld [vmem:[%s321_s1 + $0x60] sm:$0xff]  ;;  %s113_s18 = sshll.u32 %s236_s17, 4  ;;  %s114_s18 = int_to_ptr.vmem [resolvable:$true] %s113_s18 }
   0x9   :  { %184 = vmatpush3.bf16.msra.mxu0 %v181_v5  ;;  %v197_v18 = vpack.c.bf16 %v25_v17, %v24_v16  ;;  %v27_v20 = vld [vmem:[%s321_s1 + $0x68] sm:$0xff]  ;;  %v28_v22 = vld [vmem:[%s321_s1 + $0x70] sm:$0xff]  ;;  %v29_v23 = vld [vmem:[%s321_s1 + $0x78] sm:$0xff]  ;;  %s212_s1 = scalar_lea.vmem %s114_s18, 256  ;;  %p217_p1 = scmp.lt.s32.totalorder %s114_s18, %s114_s18 }
   0xa   :  { %186 = vmatprep.subr.bf16.mxu0 %v185_v8  ;;  %v201_v21 = vpack.c.bf16 %v27_v20, %v26_v19  ;;  %v205_v24 = vpack.c.bf16 %v29_v23, %v28_v22  ;;  %v13_v25 = vld [vmem:[%s320_s0 + $0x8] sm:$0xff]  ;;  %p213_p0 = scmp.ne.s32.totalorder %s114_s18, %s212_s1  ;;  %p218_p2 = scmp.lt.s32.totalorder %s212_s1, %s212_s1 }
   0xc   :  { %p219_p3 = por %p218_p2, %p217_p1 }
   0xd   :  { %188 = vmatpush3.bf16.msra.mxu0 %v185_v8 }
   0xe   :  { %190 = vmatprep.subr.bf16.mxu0 %v189_v12  ;;  %p220_p4 = pnand %p219_p3, %p213_p0 }
  0x11   :  { %192 = vmatpush3.bf16.msra.mxu0 %v189_v12 }
  0x12   :  { %194 = vmatprep.subr.bf16.mxu0 %v193_v15 }
  0x15   :  { %196 = vmatpush3.bf16.msra.mxu0 %v193_v15 }
  0x16   :  { %198 = vmatprep.subr.bf16.mxu0 %v197_v18 }
  0x19   :  { %200 = vmatpush3.bf16.msra.mxu0 %v197_v18 }
  0x1a   :  { %202 = vmatprep.subr.bf16.mxu0 %v201_v21 }
  0x1d   :  { %204 = vmatpush3.bf16.msra.mxu0 %v201_v21 }
  0x1e   :  { %206 = vmatprep.subr.bf16.mxu0 %v205_v24 }
  0x21   :  { %208 = vmatpush3.bf16.msra.mxu0 %v205_v24 }
  0x24   :  { %175 = vmatmul.mubr.f32.vlgmr.msra.gmra.mrb[0].mxu0 %v13_v25 }
  0xf7   :  { %v176_v26 = vpop.f32.mrb[0].mxu0 }
  0xf8   :  { %107 = vst.msk [vmem:[#allocation2 + $0x8] sm:$0xff] %vm105_vm0, %v176_v26  ;;  %v96_v27 = vpop.f32.mrb[1].mxu0 }
  0xf9   :  { %106 = vst.msk [vmem:[#allocation2] sm:$0xff] %vm105_vm0, %v96_v27 }
  0xfa   :  { %223 = shalt.err (!%p220_p4)
}
  0xfb   :  { %s224_s0 = scalar_lea.hbm %s322_s2, 256 }
  0xfc   :  { %p225_p5 = scmp.ne.s32.totalorder %s322_s2, %s224_s0  ;;  %p228_p6 = scmp.lt.u32.totalorder %s224_s0, %s322_s2 }
  0xfe   :  { %p230_p7 = pnand %p228_p6, %p225_p5 }
 0x100   :  { %233 = shalt.err (!%p230_p7)
}
 0x101   :  { %s237_s25 = smov 128   ;;  %s238_s26 = smov 8  }
 0x102   :  { %119 = dma.vmem_to_hbm [thread:$0]  %s114_s18, 256, %s322_s2, [#allocation3], %s237_s25, %s237_s25, %s238_s26  }
 0x103   :  { %234 = dma.done.wait [#allocation3], 256  }
 0x104   :  { %235 = vsyncadd [#allocation3], 4294967040 }
 0x105   :  { %123 = vsyncpa [#allocation3], 1 }

</bundles_post_ra>
